<compile_context>
chip_gen: v7x
topology: tpu7x:2x2x1
jax: 0.10.0
libtpu: 0.0.40
codegen_flags: <defaults>
</compile_context>

<pallas_src>
import functools

import jax
import jax.numpy as jnp
from jax import lax
from jax.experimental import pallas as pl
from jax.experimental.pallas import tpu as pltpu

C_IN = 16     # module requires inp == 16
C_OUT = 16    # module requires out == 16
K = 11        # combined depth-kernel size (largest branch)
PAD = 5       # "same" padding of the combined kernel
LANE = 128


def _round_up(v, m):
    return (v + m - 1) // m * m


def _parallel_conv_kernel(x_ref, w_ref, b_ref, o_ref, col_ref):
    # x_ref:   (D, C_IN, TS)    input tile, depth on the leading axis
    # w_ref:   (C_OUT, K*C_IN)  folded depth kernel (resident across the grid)
    # b_ref:   (C_OUT, 1)       folded bias, f32 (resident)
    # o_ref:   (D, C_OUT, TS)
    # col_ref: (K*C_IN, TS)     im2col scratch
    D = o_ref.shape[0]

    def body(d, carry):
        # Build the (K*C_IN, TS) im2col slab for output depth d.
        for k in range(K):                              # static unroll, 11 taps
            src = d + (k - PAD)                         # input depth of this tap
            idx = jnp.clip(src, 0, D - 1)
            xk = x_ref[idx]                             # (C_IN, TS) leading-axis index
            mask = jnp.logical_and(src >= 0, src < D).astype(xk.dtype)
            col_ref[k * C_IN:(k + 1) * C_IN, :] = xk * mask
        # Single deep matmul: (16, 176) @ (176, TS), f32 accumulation on the MXU.
        acc = jnp.dot(w_ref[...], col_ref[...],
                      preferred_element_type=jnp.float32)
        o_ref[d] = (acc + b_ref[...]).astype(o_ref.dtype)
        return carry

    lax.fori_loop(0, D, body, 0)


@functools.partial(jax.jit, static_argnames=("compute_dtype", "lane_tile"))
def parallel_conv_block(x, w_mat, b_col, *, compute_dtype=jnp.float32,
                        lane_tile=512):
    """x: (N, C_IN, D, H, W) float32 (NCDHW). Returns (N, C_OUT, D, H, W) f32."""
    N, C, D, H, W = x.shape
    assert C == C_IN
    S = N * H * W
    # (N, C, D, H, W) -> (D, C, N*H*W): depth leading, batch*spatial on lanes.
    xt = jnp.transpose(x, (2, 1, 0, 3, 4)).reshape(D, C, S)

    TS = min(_round_up(S, LANE), lane_tile)          # lane tile, multiple of 128
    S_pad = _round_up(S, TS)
    if S_pad != S:
        xt = jnp.pad(xt, ((0, 0), (0, 0), (0, S_pad - S)))
    xt = xt.astype(compute_dtype)
    w_mat = w_mat.astype(compute_dtype)
    b_col = b_col.astype(jnp.float32)

    out3 = pl.pallas_call(
        _parallel_conv_kernel,
        out_shape=jax.ShapeDtypeStruct((D, C_OUT, S_pad), jnp.float32),
        grid_spec=pltpu.PrefetchScalarGridSpec(
            num_scalar_prefetch=0,
            grid=(S_pad // TS,),
            in_specs=[
                pl.BlockSpec((D, C_IN, TS), lambda s: (0, 0, s)),
                pl.BlockSpec((C_OUT, K * C_IN), lambda s: (0, 0)),
                pl.BlockSpec((C_OUT, 1), lambda s: (0, 0)),
            ],
            out_specs=pl.BlockSpec((D, C_OUT, TS), lambda s: (0, 0, s)),
            scratch_shapes=[pltpu.VMEM((K * C_IN, TS), compute_dtype)],
        ),
        compiler_params=pltpu.CompilerParams(
            dimension_semantics=("parallel",)),
    )(xt, w_mat, b_col)

    # (D, C_OUT, S_pad) -> (N, C_OUT, D, H, W)
    out = out3[:, :, :S].reshape(D, C_OUT, N, H, W)
    return jnp.transpose(out, (2, 1, 0, 3, 4))


def combine_weights(w1, b1, w2, b2, w3, b3, w4, b4):
    """Fold the 4 branch Conv3d weights (OIDHW, spatial 1x1) into one size-11
    depth kernel laid out as (C_OUT, K*C_IN) (column index = k*C_IN + ci,
    matching the kernel's im2col rows), plus a combined (C_OUT, 1) bias."""
    Wk = jnp.transpose(w4[:, :, :, 0, 0], (2, 0, 1))                   # k = 0..10
    Wk = Wk.at[3:8].add(jnp.transpose(w3[:, :, :, 0, 0], (2, 0, 1)))   # size-5 branch
    Wk = Wk.at[4:7].add(jnp.transpose(w2[:, :, :, 0, 0], (2, 0, 1)))   # size-3 branch
    Wk = Wk.at[5].add(w1[:, :, 0, 0, 0])                               # size-1 branch
    w_mat = jnp.transpose(Wk, (1, 0, 2)).reshape(C_OUT, K * C_IN)
    b_col = (b1 + b2 + b3 + b4).reshape(C_OUT, 1)
    return w_mat, b_col


def reference(x, params):
    """Plain-JAX reference replicating the PyTorch forward (4 Conv3d + sum)."""
    (w1, b1), (w2, b2), (w3, b3), (w4, b4) = params
    dn = lax.conv_dimension_numbers(x.shape, w1.shape,
                                    ('NCDHW', 'OIDHW', 'NCDHW'))
    out = None
    for w, b, p in ((w1, b1, 0), (w2, b2, 1), (w3, b3, 2), (w4, b4, 5)):
        y = lax.conv_general_dilated(
            x, w, window_strides=(1, 1, 1),
            padding=[(p, p), (0, 0), (0, 0)], dimension_numbers=dn)
        y = y + b.reshape(1, -1, 1, 1, 1)
        out = y if out is None else out + y
    return out


if __name__ == "__main__":
    key = jax.random.PRNGKey(0)
    ks = jax.random.split(key, 9)

    # Deterministic synthetic parameters (Conv3d weight shapes from __init__).
    w1 = 0.1 * jax.random.normal(ks[0], (16, C_IN, 1, 1, 1), jnp.float32)
    b1 = 0.1 * jax.random.normal(ks[1], (16,), jnp.float32)
    w2 = 0.1 * jax.random.normal(ks[2], (16, 16, 3, 1, 1), jnp.float32)
    b2 = 0.1 * jax.random.normal(ks[3], (16,), jnp.float32)
    w3 = 0.1 * jax.random.normal(ks[4], (16, 16, 5, 1, 1), jnp.float32)
    b3 = 0.1 * jax.random.normal(ks[5], (16,), jnp.float32)
    w4 = 0.1 * jax.random.normal(ks[6], (C_OUT, 16, 11, 1, 1), jnp.float32)
    b4 = 0.1 * jax.random.normal(ks[7], (C_OUT,), jnp.float32)

    # Small input consistent with the module: N=2, C=16, D(spectral)=8, H=W=4.
    x = jax.random.normal(ks[8], (2, C_IN, 8, 4, 4), jnp.float32)

    w_mat, b_col = combine_weights(w1, b1, w2, b2, w3, b3, w4, b4)
    ref = reference(x, ((w1, b1), (w2, b2), (w3, b3), (w4, b4)))

    # f32 path: tight tolerance vs the 4-conv reference.
    out_f32 = jax.block_until_ready(parallel_conv_block(x, w_mat, b_col))
    assert out_f32.shape == ref.shape == (2, C_OUT, 8, 4, 4)
    assert out_f32.dtype == jnp.float32
    assert jnp.allclose(out_f32, ref, rtol=1e-4, atol=1e-4), (
        float(jnp.max(jnp.abs(out_f32 - ref))))

    # bf16 MXU path (v6e/v7x): bf16 inputs/weights, f32 accumulation & bias.
    out_bf16 = jax.block_until_ready(
        parallel_conv_block(x, w_mat, b_col, compute_dtype=jnp.bfloat16))
    assert out_bf16.shape == ref.shape
    assert out_bf16.dtype == jnp.float32
    assert jnp.allclose(out_bf16, ref, rtol=5e-2, atol=5e-2), (
        float(jnp.max(jnp.abs(out_bf16 - ref))))

    print("KERNEL_OK")
</pallas_src>

<mosaic_0001>
module attributes {stable_mosaic.version = 11 : i64} {
  func.func @_parallel_conv_kernel(%arg0: i32, %arg1: memref<8x16x128xf32, #tpu.memory_space<vmem>>, %arg2: memref<16x176xf32, #tpu.memory_space<vmem>>, %arg3: memref<16x1xf32, #tpu.memory_space<vmem>>, %arg4: memref<8x16x128xf32, #tpu.memory_space<vmem>>, %arg5: memref<176x128xf32, #tpu.memory_space<vmem>>) attributes {dimension_semantics = [#tpu.dimension_semantics<parallel>], iteration_bounds = array<i64: 1>, scalar_prefetch = 0 : i64, scratch_operands = 1 : i64, tpu.core_type = #tpu.core_type<tc>, window_params = [{transform_indices = @transform_0, window_bounds = array<i64: 8, 16, 128>}, {pipeline_mode = #tpu.pipeline_mode<synchronous>, transform_indices = @transform_1, window_bounds = array<i64: 16, 176>}, {pipeline_mode = #tpu.pipeline_mode<synchronous>, transform_indices = @transform_2, window_bounds = array<i64: 16, 1>}, {transform_indices = @transform_3, window_bounds = array<i64: 8, 16, 128>}]} {
    %c0_i32 = arith.constant 0 : i32
    %c8_i32 = arith.constant 8 : i32
    %0 = arith.addi %c0_i32, %c8_i32 : i32
    %c1_i32 = arith.constant 1 : i32
    scf.for %arg6 = %c0_i32 to %0 step %c1_i32  : i32 {
      %c-5_i32 = arith.constant -5 : i32
      %1 = arith.addi %arg6, %c-5_i32 : i32
      %c0_i32_1 = arith.constant 0 : i32
      %c7_i32 = arith.constant 7 : i32
      %2 = arith.maxsi %c0_i32_1, %1 : i32
      %3 = arith.minsi %c7_i32, %2 : i32
      %4 = arith.index_cast %3 : i32 to index
      %c0 = arith.constant 0 : index
      %c0_2 = arith.constant 0 : index
      %5 = vector.load %arg1[%4, %c0, %c0_2] : memref<8x16x128xf32, #tpu.memory_space<vmem>>, vector<1x16x128xf32>
      %6 = vector.shape_cast %5 : vector<1x16x128xf32> to vector<16x128xf32>
      %c0_i32_3 = arith.constant 0 : i32
      %7 = arith.cmpi sge, %1, %c0_i32_3 : i32
      %c8_i32_4 = arith.constant 8 : i32
      %8 = arith.cmpi slt, %1, %c8_i32_4 : i32
      %9 = arith.andi %7, %8 : i1
      %10 = arith.extui %9 : i1 to i32
      %11 = arith.sitofp %10 : i32 to f32
      %12 = vector.broadcast %11 : f32 to vector<16x128xf32>
      %13 = arith.mulf %6, %12 : vector<16x128xf32>
      %c0_5 = arith.constant 0 : index
      %c0_6 = arith.constant 0 : index
      %14 = vector.load %arg5[%c0_5, %c0_6] : memref<176x128xf32, #tpu.memory_space<vmem>>, vector<16x128xf32>
      tpu.vector_store %arg5[%c0_5, %c0_6], %13 {strides = array<i32>} : memref<176x128xf32, #tpu.memory_space<vmem>>, vector<16x128xf32>,
      %c-4_i32 = arith.constant -4 : i32
      %15 = arith.addi %arg6, %c-4_i32 : i32
      %c0_i32_7 = arith.constant 0 : i32
      %c7_i32_8 = arith.constant 7 : i32
      %16 = arith.maxsi %c0_i32_7, %15 : i32
      %17 = arith.minsi %c7_i32_8, %16 : i32
      %18 = arith.index_cast %17 : i32 to index
      %c0_9 = arith.constant 0 : index
      %c0_10 = arith.constant 0 : index
      %19 = vector.load %arg1[%18, %c0_9, %c0_10] : memref<8x16x128xf32, #tpu.memory_space<vmem>>, vector<1x16x128xf32>
      %20 = vector.shape_cast %19 : vector<1x16x128xf32> to vector<16x128xf32>
      %c0_i32_11 = arith.constant 0 : i32
      %21 = arith.cmpi sge, %15, %c0_i32_11 : i32
      %c8_i32_12 = arith.constant 8 : i32
      %22 = arith.cmpi slt, %15, %c8_i32_12 : i32
      %23 = arith.andi %21, %22 : i1
      %24 = arith.extui %23 : i1 to i32
      %25 = arith.sitofp %24 : i32 to f32
      %26 = vector.broadcast %25 : f32 to vector<16x128xf32>
      %27 = arith.mulf %20, %26 : vector<16x128xf32>
      %c16 = arith.constant 16 : index
      %c0_13 = arith.constant 0 : index
      %28 = vector.load %arg5[%c16, %c0_13] : memref<176x128xf32, #tpu.memory_space<vmem>>, vector<16x128xf32>
      tpu.vector_store %arg5[%c16, %c0_13], %27 {strides = array<i32>} : memref<176x128xf32, #tpu.memory_space<vmem>>, vector<16x128xf32>,
      %c-3_i32 = arith.constant -3 : i32
      %29 = arith.addi %arg6, %c-3_i32 : i32
      %c0_i32_14 = arith.constant 0 : i32
      %c7_i32_15 = arith.constant 7 : i32
      %30 = arith.maxsi %c0_i32_14, %29 : i32
      %31 = arith.minsi %c7_i32_15, %30 : i32
      %32 = arith.index_cast %31 : i32 to index
      %c0_16 = arith.constant 0 : index
      %c0_17 = arith.constant 0 : index
      %33 = vector.load %arg1[%32, %c0_16, %c0_17] : memref<8x16x128xf32, #tpu.memory_space<vmem>>, vector<1x16x128xf32>
      %34 = vector.shape_cast %33 : vector<1x16x128xf32> to vector<16x128xf32>
      %c0_i32_18 = arith.constant 0 : i32
      %35 = arith.cmpi sge, %29, %c0_i32_18 : i32
      %c8_i32_19 = arith.constant 8 : i32
      %36 = arith.cmpi slt, %29, %c8_i32_19 : i32
      %37 = arith.andi %35, %36 : i1
      %38 = arith.extui %37 : i1 to i32
      %39 = arith.sitofp %38 : i32 to f32
      %40 = vector.broadcast %39 : f32 to vector<16x128xf32>
      %41 = arith.mulf %34, %40 : vector<16x128xf32>
      %c32 = arith.constant 32 : index
      %c0_20 = arith.constant 0 : index
      %42 = vector.load %arg5[%c32, %c0_20] : memref<176x128xf32, #tpu.memory_space<vmem>>, vector<16x128xf32>
      tpu.vector_store %arg5[%c32, %c0_20], %41 {strides = array<i32>} : memref<176x128xf32, #tpu.memory_space<vmem>>, vector<16x128xf32>,
      %c-2_i32 = arith.constant -2 : i32
      %43 = arith.addi %arg6, %c-2_i32 : i32
      %c0_i32_21 = arith.constant 0 : i32
      %c7_i32_22 = arith.constant 7 : i32
      %44 = arith.maxsi %c0_i32_21, %43 : i32
      %45 = arith.minsi %c7_i32_22, %44 : i32
      %46 = arith.index_cast %45 : i32 to index
      %c0_23 = arith.constant 0 : index
      %c0_24 = arith.constant 0 : index
      %47 = vector.load %arg1[%46, %c0_23, %c0_24] : memref<8x16x128xf32, #tpu.memory_space<vmem>>, vector<1x16x128xf32>
      %48 = vector.shape_cast %47 : vector<1x16x128xf32> to vector<16x128xf32>
      %c0_i32_25 = arith.constant 0 : i32
      %49 = arith.cmpi sge, %43, %c0_i32_25 : i32
      %c8_i32_26 = arith.constant 8 : i32
      %50 = arith.cmpi slt, %43, %c8_i32_26 : i32
      %51 = arith.andi %49, %50 : i1
      %52 = arith.extui %51 : i1 to i32
      %53 = arith.sitofp %52 : i32 to f32
      %54 = vector.broadcast %53 : f32 to vector<16x128xf32>
      %55 = arith.mulf %48, %54 : vector<16x128xf32>
      %c48 = arith.constant 48 : index
      %c0_27 = arith.constant 0 : index
      %56 = vector.load %arg5[%c48, %c0_27] : memref<176x128xf32, #tpu.memory_space<vmem>>, vector<16x128xf32>
      tpu.vector_store %arg5[%c48, %c0_27], %55 {strides = array<i32>} : memref<176x128xf32, #tpu.memory_space<vmem>>, vector<16x128xf32>,
      %c-1_i32 = arith.constant -1 : i32
      %57 = arith.addi %arg6, %c-1_i32 : i32
      %c0_i32_28 = arith.constant 0 : i32
      %c7_i32_29 = arith.constant 7 : i32
      %58 = arith.maxsi %c0_i32_28, %57 : i32
      %59 = arith.minsi %c7_i32_29, %58 : i32
      %60 = arith.index_cast %59 : i32 to index
      %c0_30 = arith.constant 0 : index
      %c0_31 = arith.constant 0 : index
      %61 = vector.load %arg1[%60, %c0_30, %c0_31] : memref<8x16x128xf32, #tpu.memory_space<vmem>>, vector<1x16x128xf32>
      %62 = vector.shape_cast %61 : vector<1x16x128xf32> to vector<16x128xf32>
      %c0_i32_32 = arith.constant 0 : i32
      %63 = arith.cmpi sge, %57, %c0_i32_32 : i32
      %c8_i32_33 = arith.constant 8 : i32
      %64 = arith.cmpi slt, %57, %c8_i32_33 : i32
      %65 = arith.andi %63, %64 : i1
      %66 = arith.extui %65 : i1 to i32
      %67 = arith.sitofp %66 : i32 to f32
      %68 = vector.broadcast %67 : f32 to vector<16x128xf32>
      %69 = arith.mulf %62, %68 : vector<16x128xf32>
      %c64 = arith.constant 64 : index
      %c0_34 = arith.constant 0 : index
      %70 = vector.load %arg5[%c64, %c0_34] : memref<176x128xf32, #tpu.memory_space<vmem>>, vector<16x128xf32>
      tpu.vector_store %arg5[%c64, %c0_34], %69 {strides = array<i32>} : memref<176x128xf32, #tpu.memory_space<vmem>>, vector<16x128xf32>,
      %c0_i32_35 = arith.constant 0 : i32
      %71 = arith.addi %arg6, %c0_i32_35 : i32
      %c0_i32_36 = arith.constant 0 : i32
      %c7_i32_37 = arith.constant 7 : i32
      %72 = arith.maxsi %c0_i32_36, %71 : i32
      %73 = arith.minsi %c7_i32_37, %72 : i32
      %74 = arith.index_cast %73 : i32 to index
      %c0_38 = arith.constant 0 : index
      %c0_39 = arith.constant 0 : index
      %75 = vector.load %arg1[%74, %c0_38, %c0_39] : memref<8x16x128xf32, #tpu.memory_space<vmem>>, vector<1x16x128xf32>
      %76 = vector.shape_cast %75 : vector<1x16x128xf32> to vector<16x128xf32>
      %c0_i32_40 = arith.constant 0 : i32
      %77 = arith.cmpi sge, %71, %c0_i32_40 : i32
      %c8_i32_41 = arith.constant 8 : i32
      %78 = arith.cmpi slt, %71, %c8_i32_41 : i32
      %79 = arith.andi %77, %78 : i1
      %80 = arith.extui %79 : i1 to i32
      %81 = arith.sitofp %80 : i32 to f32
      %82 = vector.broadcast %81 : f32 to vector<16x128xf32>
      %83 = arith.mulf %76, %82 : vector<16x128xf32>
      %c80 = arith.constant 80 : index
      %c0_42 = arith.constant 0 : index
      %84 = vector.load %arg5[%c80, %c0_42] : memref<176x128xf32, #tpu.memory_space<vmem>>, vector<16x128xf32>
      tpu.vector_store %arg5[%c80, %c0_42], %83 {strides = array<i32>} : memref<176x128xf32, #tpu.memory_space<vmem>>, vector<16x128xf32>,
      %c1_i32_43 = arith.constant 1 : i32
      %85 = arith.addi %arg6, %c1_i32_43 : i32
      %c0_i32_44 = arith.constant 0 : i32
      %c7_i32_45 = arith.constant 7 : i32
      %86 = arith.maxsi %c0_i32_44, %85 : i32
      %87 = arith.minsi %c7_i32_45, %86 : i32
      %88 = arith.index_cast %87 : i32 to index
      %c0_46 = arith.constant 0 : index
      %c0_47 = arith.constant 0 : index
      %89 = vector.load %arg1[%88, %c0_46, %c0_47] : memref<8x16x128xf32, #tpu.memory_space<vmem>>, vector<1x16x128xf32>
      %90 = vector.shape_cast %89 : vector<1x16x128xf32> to vector<16x128xf32>
      %c0_i32_48 = arith.constant 0 : i32
      %91 = arith.cmpi sge, %85, %c0_i32_48 : i32
      %c8_i32_49 = arith.constant 8 : i32
      %92 = arith.cmpi slt, %85, %c8_i32_49 : i32
      %93 = arith.andi %91, %92 : i1
      %94 = arith.extui %93 : i1 to i32
      %95 = arith.sitofp %94 : i32 to f32
      %96 = vector.broadcast %95 : f32 to vector<16x128xf32>
      %97 = arith.mulf %90, %96 : vector<16x128xf32>
      %c96 = arith.constant 96 : index
      %c0_50 = arith.constant 0 : index
      %98 = vector.load %arg5[%c96, %c0_50] : memref<176x128xf32, #tpu.memory_space<vmem>>, vector<16x128xf32>
      tpu.vector_store %arg5[%c96, %c0_50], %97 {strides = array<i32>} : memref<176x128xf32, #tpu.memory_space<vmem>>, vector<16x128xf32>,
      %c2_i32 = arith.constant 2 : i32
      %99 = arith.addi %arg6, %c2_i32 : i32
      %c0_i32_51 = arith.constant 0 : i32
      %c7_i32_52 = arith.constant 7 : i32
      %100 = arith.maxsi %c0_i32_51, %99 : i32
      %101 = arith.minsi %c7_i32_52, %100 : i32
      %102 = arith.index_cast %101 : i32 to index
      %c0_53 = arith.constant 0 : index
      %c0_54 = arith.constant 0 : index
      %103 = vector.load %arg1[%102, %c0_53, %c0_54] : memref<8x16x128xf32, #tpu.memory_space<vmem>>, vector<1x16x128xf32>
      %104 = vector.shape_cast %103 : vector<1x16x128xf32> to vector<16x128xf32>
      %c0_i32_55 = arith.constant 0 : i32
      %105 = arith.cmpi sge, %99, %c0_i32_55 : i32
      %c8_i32_56 = arith.constant 8 : i32
      %106 = arith.cmpi slt, %99, %c8_i32_56 : i32
      %107 = arith.andi %105, %106 : i1
      %108 = arith.extui %107 : i1 to i32
      %109 = arith.sitofp %108 : i32 to f32
      %110 = vector.broadcast %109 : f32 to vector<16x128xf32>
      %111 = arith.mulf %104, %110 : vector<16x128xf32>
      %c112 = arith.constant 112 : index
      %c0_57 = arith.constant 0 : index
      %112 = vector.load %arg5[%c112, %c0_57] : memref<176x128xf32, #tpu.memory_space<vmem>>, vector<16x128xf32>
      tpu.vector_store %arg5[%c112, %c0_57], %111 {strides = array<i32>} : memref<176x128xf32, #tpu.memory_space<vmem>>, vector<16x128xf32>,
      %c3_i32 = arith.constant 3 : i32
      %113 = arith.addi %arg6, %c3_i32 : i32
      %c0_i32_58 = arith.constant 0 : i32
      %c7_i32_59 = arith.constant 7 : i32
      %114 = arith.maxsi %c0_i32_58, %113 : i32
      %115 = arith.minsi %c7_i32_59, %114 : i32
      %116 = arith.index_cast %115 : i32 to index
      %c0_60 = arith.constant 0 : index
      %c0_61 = arith.constant 0 : index
      %117 = vector.load %arg1[%116, %c0_60, %c0_61] : memref<8x16x128xf32, #tpu.memory_space<vmem>>, vector<1x16x128xf32>
      %118 = vector.shape_cast %117 : vector<1x16x128xf32> to vector<16x128xf32>
      %c0_i32_62 = arith.constant 0 : i32
      %119 = arith.cmpi sge, %113, %c0_i32_62 : i32
      %c8_i32_63 = arith.constant 8 : i32
      %120 = arith.cmpi slt, %113, %c8_i32_63 : i32
      %121 = arith.andi %119, %120 : i1
      %122 = arith.extui %121 : i1 to i32
      %123 = arith.sitofp %122 : i32 to f32
      %124 = vector.broadcast %123 : f32 to vector<16x128xf32>
      %125 = arith.mulf %118, %124 : vector<16x128xf32>
      %c128 = arith.constant 128 : index
      %c0_64 = arith.constant 0 : index
      %126 = vector.load %arg5[%c128, %c0_64] : memref<176x128xf32, #tpu.memory_space<vmem>>, vector<16x128xf32>
      tpu.vector_store %arg5[%c128, %c0_64], %125 {strides = array<i32>} : memref<176x128xf32, #tpu.memory_space<vmem>>, vector<16x128xf32>,
      %c4_i32 = arith.constant 4 : i32
      %127 = arith.addi %arg6, %c4_i32 : i32
      %c0_i32_65 = arith.constant 0 : i32
      %c7_i32_66 = arith.constant 7 : i32
      %128 = arith.maxsi %c0_i32_65, %127 : i32
      %129 = arith.minsi %c7_i32_66, %128 : i32
      %130 = arith.index_cast %129 : i32 to index
      %c0_67 = arith.constant 0 : index
      %c0_68 = arith.constant 0 : index
      %131 = vector.load %arg1[%130, %c0_67, %c0_68] : memref<8x16x128xf32, #tpu.memory_space<vmem>>, vector<1x16x128xf32>
      %132 = vector.shape_cast %131 : vector<1x16x128xf32> to vector<16x128xf32>
      %c0_i32_69 = arith.constant 0 : i32
      %133 = arith.cmpi sge, %127, %c0_i32_69 : i32
      %c8_i32_70 = arith.constant 8 : i32
      %134 = arith.cmpi slt, %127, %c8_i32_70 : i32
      %135 = arith.andi %133, %134 : i1
      %136 = arith.extui %135 : i1 to i32
      %137 = arith.sitofp %136 : i32 to f32
      %138 = vector.broadcast %137 : f32 to vector<16x128xf32>
      %139 = arith.mulf %132, %138 : vector<16x128xf32>
      %c144 = arith.constant 144 : index
      %c0_71 = arith.constant 0 : index
      %140 = vector.load %arg5[%c144, %c0_71] : memref<176x128xf32, #tpu.memory_space<vmem>>, vector<16x128xf32>
      tpu.vector_store %arg5[%c144, %c0_71], %139 {strides = array<i32>} : memref<176x128xf32, #tpu.memory_space<vmem>>, vector<16x128xf32>,
      %c5_i32 = arith.constant 5 : i32
      %141 = arith.addi %arg6, %c5_i32 : i32
      %c0_i32_72 = arith.constant 0 : i32
      %c7_i32_73 = arith.constant 7 : i32
      %142 = arith.maxsi %c0_i32_72, %141 : i32
      %143 = arith.minsi %c7_i32_73, %142 : i32
      %144 = arith.index_cast %143 : i32 to index
      %c0_74 = arith.constant 0 : index
      %c0_75 = arith.constant 0 : index
      %145 = vector.load %arg1[%144, %c0_74, %c0_75] : memref<8x16x128xf32, #tpu.memory_space<vmem>>, vector<1x16x128xf32>
      %146 = vector.shape_cast %145 : vector<1x16x128xf32> to vector<16x128xf32>
      %c0_i32_76 = arith.constant 0 : i32
      %147 = arith.cmpi sge, %141, %c0_i32_76 : i32
      %c8_i32_77 = arith.constant 8 : i32
      %148 = arith.cmpi slt, %141, %c8_i32_77 : i32
      %149 = arith.andi %147, %148 : i1
      %150 = arith.extui %149 : i1 to i32
      %151 = arith.sitofp %150 : i32 to f32
      %152 = vector.broadcast %151 : f32 to vector<16x128xf32>
      %153 = arith.mulf %146, %152 : vector<16x128xf32>
      %c160 = arith.constant 160 : index
      %c0_78 = arith.constant 0 : index
      %154 = vector.load %arg5[%c160, %c0_78] : memref<176x128xf32, #tpu.memory_space<vmem>>, vector<16x128xf32>
      tpu.vector_store %arg5[%c160, %c0_78], %153 {strides = array<i32>} : memref<176x128xf32, #tpu.memory_space<vmem>>, vector<16x128xf32>,
      %c0_79 = arith.constant 0 : index
      %c0_80 = arith.constant 0 : index
      %155 = vector.load %arg2[%c0_79, %c0_80] : memref<16x176xf32, #tpu.memory_space<vmem>>, vector<16x176xf32>
      %c0_81 = arith.constant 0 : index
      %c0_82 = arith.constant 0 : index
      %156 = vector.load %arg5[%c0_81, %c0_82] : memref<176x128xf32, #tpu.memory_space<vmem>>, vector<176x128xf32>
      %cst = arith.constant dense<0.000000e+00> : vector<16x128xf32>
      %157 = tpu.matmul %155, %156, %cst {dimension_numbers = #tpu.dot_dimension_numbers<[1], [0], [0], [1], [0, 0, 1, 1], [], []>} : vector<16x176xf32>, vector<176x128xf32>, vector<16x128xf32> -> vector<16x128xf32>
      %c0_83 = arith.constant 0 : index
      %c0_84 = arith.constant 0 : index
      %158 = vector.load %arg3[%c0_83, %c0_84] : memref<16x1xf32, #tpu.memory_space<vmem>>, vector<16x1xf32>
      %159 = vector.broadcast %158 : vector<16x1xf32> to vector<16x128xf32>
      %160 = arith.addf %157, %159 : vector<16x128xf32>
      %161 = arith.index_cast %arg6 : i32 to index
      %c0_85 = arith.constant 0 : index
      %c0_86 = arith.constant 0 : index
      %162 = vector.load %arg4[%161, %c0_85, %c0_86] : memref<8x16x128xf32, #tpu.memory_space<vmem>>, vector<1x16x128xf32>
      %163 = vector.shape_cast %162 : vector<1x16x128xf32> to vector<16x128xf32>
      %164 = vector.shape_cast %160 : vector<16x128xf32> to vector<1x16x128xf32>
      tpu.vector_store %arg4[%161, %c0_85, %c0_86], %164 {strides = array<i32>} : memref<8x16x128xf32, #tpu.memory_space<vmem>>, vector<1x16x128xf32>,
    }
    %c8_i32_0 = arith.constant 8 : i32
    return
  }
  func.func @transform_0(%arg0: i32) -> (i32, i32, i32) {
    %c0_i32 = arith.constant 0 : i32
    %c0_i32_0 = arith.constant 0 : i32
    %c0_i32_1 = arith.constant 0 : i32
    return %c0_i32, %c0_i32_0, %arg0 : i32, i32, i32
  }
  func.func @transform_1(%arg0: i32) -> (i32, i32) {
    %c0_i32 = arith.constant 0 : i32
    %c0_i32_0 = arith.constant 0 : i32
    %c0_i32_1 = arith.constant 0 : i32
    return %c0_i32, %c0_i32_0 : i32, i32
  }
  func.func @transform_2(%arg0: i32) -> (i32, i32) {
    %c0_i32 = arith.constant 0 : i32
    %c0_i32_0 = arith.constant 0 : i32
    %c0_i32_1 = arith.constant 0 : i32
    return %c0_i32, %c0_i32_0 : i32, i32
  }
  func.func @transform_3(%arg0: i32) -> (i32, i32, i32) {
    %c0_i32 = arith.constant 0 : i32
    %c0_i32_0 = arith.constant 0 : i32
    %c0_i32_1 = arith.constant 0 : i32
    return %c0_i32, %c0_i32_0, %arg0 : i32, i32, i32
  }
}

</mosaic_0001>

<bundles_post_ra>
// kernel: parallel_conv_block.1
= control target key start
LH: loop header
LB: loop body
LE: loop exit
PB: predicated region body
PF: predicated region fallthrough
CT: control target
= control target key end

     0   :  { %s594_s12 = smov 0   ;;  %s735_s0 = inlined_call_operand.vmem [shape: f32[8,16,128], index: 0, kind: input, shape index: {}]   ;;  %s736_s1 = inlined_call_operand.vmem [shape: f32[16,176], index: 1, kind: input, shape index: {}]   ;;  %s737_s2 = inlined_call_operand.vmem [shape: f32[16,1], index: 2, kind: input, shape index: {}]   ;;  %s738_s3 = inlined_call_operand.vmem [shape: f32[8,16,128], index: 3, kind: output, shape index: {}]  }
   0x1 LB: > { %v240_v0 = vld [vmem:[%s736_s1 + $0x8] sm:$0xff]  ;;  %vm277_vm0 = vcmask 392192   ;;  %v242_v1 = vld [vmem:[%s736_s1 + $0x18] sm:$0xff]  ;;  %v572_v2 = vmov 0.0|0.0   ;;  %v265_v3 = vld [vmem:[%s737_s2] sm:$0xff]  ;;  %s20_s19 = sadd.s32 4294967291, %s570_s12  ;;  %s570_s12 = sphi %s594_s12, %s743_s12  }
   0x2   : > { %498 = vmatprep.subr.bf16.mxu0 %v572_v2  ;;  %531 = vmatprep.subr.bf16.mxu1 %v572_v2  ;;  %s612_s20 = sadd.s32 4294967292, %s570_s12  ;;  %p21_p0 = scmp.gt.s32.totalorder %s20_s19, 0  ;;  %v573_v4 = vmov 0   ;;  %v266_v5 = vld [vmem:[%s737_s2 + $0x8] sm:$0xff] }
   0x3   : > { %473 = vmatprep.mubr.msk.f32.mxu0 %vm277_vm0, %v240_v0  ;;  %474 = vmatprep.mubr.msk.f32.mxu1 %vm277_vm0, %v242_v1  ;;  %p396_p1 = scmp.lt.s32.totalorder %s20_s19, 7  ;;  %p29_p2 = scmp.ge.s32.totalorder %s20_s19, 0 }
   0x4   : > { %563 = vset.pattern.permute.xlu0 %v573_v4  ;;  %p30_p3 = scmp.lt.s32.totalorder %s20_s19, 8  ;;  %s745_s19 = smov (!%p21_p0, %s20_s19), 0 }
   0x5   : > { %269 = vperm.xlu0 %563, %v265_v3   ;;  %p41_p5 = scmp.gt.s32.totalorder %s612_s20, 0  ;;  %s747_s19 = smov (!%p396_p1, %s745_s19), 7 }
   0x6   : > { %p31_p4 = pnand %p30_p3, %p29_p2  ;;  %s401_s24 = sshll.u32 %s747_s19, 4 }
   0x7   : > { %p403_p6 = scmp.lt.s32.totalorder %s612_s20, 7  ;;  %s26_s27 = scalar_lea.vmem %s735_s0, %s401_s24 }
   0x8   : > { %s402_s23 = scalar_select %p31_p4, 0, 1  ;;  %v27_v6 = vld [vmem:[%s26_s27] sm:$0xff]  ;;  %v28_v7 = vld [vmem:[%s26_s27 + $0x8] sm:$0xff] }
   0x9   : > { %274 = vperm.xlu0 %563, %v266_v5   ;;  %s42_s29 = scalar_select %p41_p5, %s612_s20, 0 }
   0xa   : > { %s34_s28 = scvt.s32.f32 %s402_s23  ;;  %p49_p7 = scmp.ge.s32.totalorder %s612_s20, 0 }
   0xb   : > { %p50_p8 = scmp.lt.s32.totalorder %s612_s20, 8  ;;  %s749_s29 = smov (!%p403_p6, %s42_s29), 7 }
   0xc   : > { %v35_v8 = vstv %s34_s28  ;;  %s60_s4 = sadd.s32 4294967293, %s570_s12  ;;  %s408_s5 = sshll.u32 %s749_s29, 4 }
   0xd   : > { %v36_v9 = vmul.f32 %v35_v8, %v27_v6  ;;  %v37_v10 = vmul.f32 %v35_v8, %v28_v7  ;;  %p625_p9 = pnand %p50_p8, %p49_p7  ;;  %p61_p10 = scmp.gt.s32.totalorder %s60_s4, 0 }
   0xe   : > { %s46_s8 = scalar_lea.vmem %s735_s0, %s408_s5  ;;  %p410_p11 = scmp.lt.s32.totalorder %s60_s4, 7 }
   0xf   : > { %v499_v11 = vpack.c.bf16 %v37_v10, %v36_v9  ;;  %s409_s9 = scalar_select %p625_p9, 0, 1  ;;  %v47_v12 = vld [vmem:[%s46_s8] sm:$0xff]  ;;  %v48_v13 = vld [vmem:[%s46_s8 + $0x8] sm:$0xff]  ;;  %v241_v10 = vld [vmem:[%s736_s1 + $0x10] sm:$0xff] }
  0x10   : > { %s62_s10 = scalar_select %p61_p10, %s60_s4, 0  ;;  %v239_v9 = vld [vmem:[%s736_s1] sm:$0xff] }
  0x11   : > { %500 = vmatpush1.bf16.msra.mxu0 %v499_v11  ;;  %542 = vmatpush1.bf16.msra.mxu1 %v499_v11  ;;  %s54_s11 = scvt.s32.f32 %s409_s9  ;;  %p69_p12 = scmp.ge.s32.totalorder %s60_s4, 0 }
  0x12   : > { %501 = vmatprep.subr.bf16.mxu0 %v572_v2  ;;  %532 = vmatprep.subr.bf16.mxu1 %v572_v2  ;;  %s751_s10 = smov (!%p410_p11, %s62_s10), 7  ;;  %p70_p13 = scmp.lt.s32.totalorder %s60_s4, 8 }
  0x13   : > { %v55_v14 = vstv %s54_s11  ;;  %s80_s13 = sadd.s32 4294967294, %s570_s12  ;;  %s415_s14 = sshll.u32 %s751_s10, 4 }
  0x14   : > { %v56_v15 = vmul.f32 %v55_v14, %v47_v12  ;;  %v57_v16 = vmul.f32 %v55_v14, %v48_v13  ;;  %p81_p0 = scmp.gt.s32.totalorder %s80_s13, 0  ;;  %s66_s17 = scalar_lea.vmem %s735_s0, %s415_s14 }
  0x15   : > { %p71_p1 = pnand %p70_p13, %p69_p12  ;;  %p417_p2 = scmp.lt.s32.totalorder %s80_s13, 7  ;;  %v67_v18 = vld [vmem:[%s66_s17] sm:$0xff]  ;;  %v68_v19 = vld [vmem:[%s66_s17 + $0x8] sm:$0xff] }
  0x16   : > { %v502_v17 = vpack.c.bf16 %v57_v16, %v56_v15  ;;  %s82_s18 = scalar_select %p81_p0, %s80_s13, 0 }
  0x17   : > { %s416_s19 = scalar_select %p71_p1, 0, 1 }
  0x18   : > { %503 = vmatpush1.bf16.msra.mxu0 %v502_v17  ;;  %543 = vmatpush1.bf16.msra.mxu1 %v502_v17  ;;  %p89_p3 = scmp.ge.s32.totalorder %s80_s13, 0  ;;  %p90_p4 = scmp.lt.s32.totalorder %s80_s13, 8 }
  0x19   : > { %504 = vmatprep.subr.bf16.mxu0 %v572_v2  ;;  %533 = vmatprep.subr.bf16.mxu1 %v572_v2  ;;  %s74_s20 = scvt.s32.f32 %s416_s19  ;;  %s753_s18 = smov (!%p417_p2, %s82_s18), 7 }
  0x1a   : > { %p643_p5 = pnand %p90_p4, %p89_p3  ;;  %s100_s22 = sadd.s32 4294967295, %s570_s12 }
  0x1b   : > { %v75_v20 = vstv %s74_s20  ;;  %s422_s23 = sshll.u32 %s753_s18, 4  ;;  %p101_p6 = scmp.gt.s32.totalorder %s100_s22, 0 }
  0x1c   : > { %v76_v21 = vmul.f32 %v75_v20, %v67_v18  ;;  %v77_v22 = vmul.f32 %v75_v20, %v68_v19  ;;  %s86_s26 = scalar_lea.vmem %s735_s0, %s422_s23  ;;  %p424_p7 = scmp.lt.s32.totalorder %s100_s22, 7 }
  0x1d   : > { %s423_s27 = scalar_select %p643_p5, 0, 1  ;;  %v87_v24 = vld [vmem:[%s86_s26] sm:$0xff]  ;;  %v88_v25 = vld [vmem:[%s86_s26 + $0x8] sm:$0xff] }
  0x1e   : > { %v505_v23 = vpack.c.bf16 %v77_v22, %v76_v21  ;;  %s102_s28 = scalar_select %p101_p6, %s100_s22, 0 }
  0x1f   : > { %s94_s29 = scvt.s32.f32 %s423_s27  ;;  %p109_p8 = scmp.ge.s32.totalorder %s100_s22, 0 }
  0x20   : > { %506 = vmatpush1.bf16.msra.mxu0 %v505_v23  ;;  %544 = vmatpush1.bf16.msra.mxu1 %v505_v23  ;;  %s755_s28 = smov (!%p424_p7, %s102_s28), 7  ;;  %p110_p9 = scmp.lt.s32.totalorder %s100_s22, 8 }
  0x21   : > { %507 = vmatprep.subr.bf16.mxu0 %v572_v2  ;;  %534 = vmatprep.subr.bf16.mxu1 %v572_v2  ;;  %v95_v26 = vstv %s94_s29  ;;  %p120_p10 = scmp.gt.s32.totalorder %s570_s12, 0  ;;  %s429_s30 = sshll.u32 %s755_s28, 4 }
  0x22   : > { %v96_v27 = vmul.f32 %v95_v26, %v87_v24  ;;  %v97_v28 = vmul.f32 %v95_v26, %v88_v25  ;;  %p431_p11 = scmp.lt.s32.totalorder %s570_s12, 7  ;;  %s106_s6 = scalar_lea.vmem %s735_s0, %s429_s30 }
  0x23   : > { %p111_p12 = pnand %p110_p9, %p109_p8  ;;  %v107_v30 = vld [vmem:[%s106_s6] sm:$0xff]  ;;  %v108_v31 = vld [vmem:[%s106_s6 + $0x8] sm:$0xff]  ;;  %p128_p13 = scmp.ge.s32.totalorder %s570_s12, 0 }
  0x24   : > { %v508_v29 = vpack.c.bf16 %v97_v28, %v96_v27  ;;  %s121_s7 = scalar_select %p120_p10, %s570_s12, 0 }
  0x25   : > { %s430_s8 = scalar_select %p111_p12, 0, 1 }
  0x26   : > { %509 = vmatpush1.bf16.msra.mxu0 %v508_v29  ;;  %545 = vmatpush1.bf16.msra.mxu1 %v508_v29  ;;  %s757_s7 = smov (!%p431_p11, %s121_s7), 7  ;;  %p129_p0 = scmp.lt.s32.totalorder %s570_s12, 8 }
  0x27   : > { %510 = vmatprep.subr.bf16.mxu0 %v572_v2  ;;  %535 = vmatprep.subr.bf16.mxu1 %v572_v2  ;;  %s114_s9 = scvt.s32.f32 %s430_s8  ;;  %s436_s10 = sshll.u32 %s757_s7, 4 }
  0x28   : > { %s125_s14 = scalar_lea.vmem %s735_s0, %s436_s10  ;;  %s669_s15 = sadd.s32 1, %s570_s12  }
  0x29   : > { %v115_v32 = vstv %s114_s9  ;;  %p130_p1 = pnand %p129_p0, %p128_p13  ;;  %p140_p2 = scmp.gt.s32.totalorder %s669_s15, 0  ;;  %v126_v36 = vld [vmem:[%s125_s14] sm:$0xff]  ;;  %v127_v37 = vld [vmem:[%s125_s14 + $0x8] sm:$0xff] }
  0x2a   : > { %v116_v33 = vmul.f32 %v115_v32, %v107_v30  ;;  %v117_v34 = vmul.f32 %v115_v32, %v108_v31  ;;  %p438_p3 = scmp.lt.s32.totalorder %s669_s15, 7  ;;  %p148_p4 = scmp.ge.s32.totalorder %s669_s15, 0 }
  0x2b   : > { %s437_s16 = scalar_select %p130_p1, 0, 1 }
  0x2c   : > { %v511_v35 = vpack.c.bf16 %v117_v34, %v116_v33  ;;  %s141_s17 = scalar_select %p140_p2, %s669_s15, 0 }
  0x2d   : > { %s133_s18 = scvt.s32.f32 %s437_s16  ;;  %p149_p5 = scmp.lt.s32.totalorder %s669_s15, 8 }
  0x2e   : > { %512 = vmatpush1.bf16.msra.mxu0 %v511_v35  ;;  %546 = vmatpush1.bf16.msra.mxu1 %v511_v35  ;;  %s759_s17 = smov (!%p438_p3, %s141_s17), 7  ;;  %s159_s20 = sadd.s32 2, %s570_s12 }
  0x2f   : > { %513 = vmatprep.subr.bf16.mxu0 %v572_v2  ;;  %536 = vmatprep.subr.bf16.mxu1 %v572_v2  ;;  %v134_v38 = vstv %s133_s18  ;;  %p680_p6 = pnand %p149_p5, %p148_p4  ;;  %s443_s21 = sshll.u32 %s759_s17, 4 }
  0x30   : > { %v135_v39 = vmul.f32 %v134_v38, %v126_v36  ;;  %v136_v40 = vmul.f32 %v134_v38, %v127_v37  ;;  %p160_p7 = scmp.gt.s32.totalorder %s159_s20, 0  ;;  %s145_s24 = scalar_lea.vmem %s735_s0, %s443_s21 }
  0x31   : > { %p445_p8 = scmp.lt.s32.totalorder %s159_s20, 7  ;;  %v146_v42 = vld [vmem:[%s145_s24] sm:$0xff]  ;;  %v147_v43 = vld [vmem:[%s145_s24 + $0x8] sm:$0xff]  ;;  %p168_p9 = scmp.ge.s32.totalorder %s159_s20, 0 }
  0x32   : > { %v514_v41 = vpack.c.bf16 %v136_v40, %v135_v39  ;;  %s444_s25 = scalar_select %p680_p6, 0, 1 }
  0x33   : > { %s161_s26 = scalar_select %p160_p7, %s159_s20, 0 }
  0x34   : > { %515 = vmatpush1.bf16.msra.mxu0 %v514_v41  ;;  %547 = vmatpush1.bf16.msra.mxu1 %v514_v41  ;;  %s153_s27 = scvt.s32.f32 %s444_s25  ;;  %p169_p10 = scmp.lt.s32.totalorder %s159_s20, 8 }
  0x35   : > { %516 = vmatprep.subr.bf16.mxu0 %v572_v2  ;;  %537 = vmatprep.subr.bf16.mxu1 %v572_v2  ;;  %s761_s26 = smov (!%p445_p8, %s161_s26), 7  ;;  %s179_s28 = sadd.s32 3, %s570_s12 }
  0x36   : > { %v154_v44 = vstv %s153_s27  ;;  %s450_s29 = sshll.u32 %s761_s26, 4  ;;  %p180_p11 = scmp.gt.s32.totalorder %s179_s28, 0 }
  0x37   : > { %v155_v45 = vmul.f32 %v154_v44, %v146_v42  ;;  %v156_v46 = vmul.f32 %v154_v44, %v147_v43  ;;  %s165_s5 = scalar_lea.vmem %s735_s0, %s450_s29  ;;  %p170_p12 = pnand %p169_p10, %p168_p9 }
  0x38   : > { %s181_s6 = scalar_select %p180_p11, %s179_s28, 0  ;;  %v166_v48 = vld [vmem:[%s165_s5] sm:$0xff]  ;;  %v167_v49 = vld [vmem:[%s165_s5 + $0x8] sm:$0xff] }
  0x39   : > { %v517_v47 = vpack.c.bf16 %v156_v46, %v155_v45  ;;  %s451_s7 = scalar_select %p170_p12, 0, 1 }
  0x3a   : > { %p452_p13 = scmp.lt.s32.totalorder %s179_s28, 7  ;;  %p188_p0 = scmp.ge.s32.totalorder %s179_s28, 0 }
  0x3b   : > { %518 = vmatpush1.bf16.msra.mxu0 %v517_v47  ;;  %548 = vmatpush1.bf16.msra.mxu1 %v517_v47  ;;  %s173_s8 = scvt.s32.f32 %s451_s7  ;;  %p189_p1 = scmp.lt.s32.totalorder %s179_s28, 8 }
  0x3c   : > { %519 = vmatprep.subr.bf16.mxu0 %v572_v2  ;;  %538 = vmatprep.subr.bf16.mxu1 %v572_v2  ;;  %s763_s6 = smov (!%p452_p13, %s181_s6), 7  ;;  %s199_s10 = sadd.s32 4, %s570_s12 }
  0x3d   : > { %v174_v50 = vstv %s173_s8  ;;  %p698_p2 = pnand %p189_p1, %p188_p0  ;;  %s457_s11 = sshll.u32 %s763_s6, 4 }
  0x3e   : > { %v175_v51 = vmul.f32 %v174_v50, %v166_v48  ;;  %v176_v52 = vmul.f32 %v174_v50, %v167_v49  ;;  %p200_p3 = scmp.gt.s32.totalorder %s199_s10, 0  ;;  %s185_s16 = scalar_lea.vmem %s735_s0, %s457_s11 }
  0x3f   : > { %p459_p4 = scmp.lt.s32.totalorder %s199_s10, 7  ;;  %v186_v54 = vld [vmem:[%s185_s16] sm:$0xff]  ;;  %v187_v55 = vld [vmem:[%s185_s16 + $0x8] sm:$0xff]  ;;  %p208_p5 = scmp.ge.s32.totalorder %s199_s10, 0 }
  0x40   : > { %v520_v53 = vpack.c.bf16 %v176_v52, %v175_v51  ;;  %s458_s17 = scalar_select %p698_p2, 0, 1 }
  0x41   : > { %s201_s18 = scalar_select %p200_p3, %s199_s10, 0 }
  0x42   : > { %521 = vmatpush1.bf16.msra.mxu0 %v520_v53  ;;  %549 = vmatpush1.bf16.msra.mxu1 %v520_v53  ;;  %s193_s19 = scvt.s32.f32 %s458_s17  ;;  %p209_p6 = scmp.lt.s32.totalorder %s199_s10, 8 }
  0x43   : > { %522 = vmatprep.subr.bf16.mxu0 %v572_v2  ;;  %539 = vmatprep.subr.bf16.mxu1 %v572_v2  ;;  %s765_s18 = smov (!%p459_p4, %s201_s18), 7  ;;  %s219_s20 = sadd.s32 5, %s570_s12 }
  0x44   : > { %v194_v56 = vstv %s193_s19  ;;  %s464_s21 = sshll.u32 %s765_s18, 4  ;;  %p220_p7 = scmp.gt.s32.totalorder %s219_s20, 0 }
  0x45   : > { %v195_v57 = vmul.f32 %v194_v56, %v186_v54  ;;  %v196_v58 = vmul.f32 %v194_v56, %v187_v55  ;;  %s205_s24 = scalar_lea.vmem %s735_s0, %s464_s21  ;;  %p210_p8 = pnand %p209_p6, %p208_p5 }
  0x46   : > { %s221_s25 = scalar_select %p220_p7, %s219_s20, 0  ;;  %v206_v60 = vld [vmem:[%s205_s24] sm:$0xff]  ;;  %v207_v61 = vld [vmem:[%s205_s24 + $0x8] sm:$0xff] }
  0x47   : > { %v523_v59 = vpack.c.bf16 %v196_v58, %v195_v57  ;;  %s465_s26 = scalar_select %p210_p8, 0, 1 }
  0x48   : > { %p466_p9 = scmp.lt.s32.totalorder %s219_s20, 7  ;;  %p228_p10 = scmp.ge.s32.totalorder %s219_s20, 0 }
  0x49   : > { %524 = vmatpush1.bf16.msra.mxu0 %v523_v59  ;;  %550 = vmatpush1.bf16.msra.mxu1 %v523_v59  ;;  %s213_s27 = scvt.s32.f32 %s465_s26  ;;  %p229_p11 = scmp.lt.s32.totalorder %s219_s20, 8 }
  0x4a   : > { %525 = vmatprep.subr.bf16.mxu0 %v572_v2  ;;  %540 = vmatprep.subr.bf16.mxu1 %v572_v2  ;;  %s767_s25 = smov (!%p466_p9, %s221_s25), 7  ;;  %s475_s11 = sshll.u32 %s570_s12, 4 }
  0x4b   : > { %v214_v62 = vstv %s213_s27  ;;  %p230_p12 = pnand %p229_p11, %p228_p10  ;;  %s471_s28 = sshll.u32 %s767_s25, 4 }
  0x4c   : > { %v215_v63 = vmul.f32 %v214_v62, %v206_v60  ;;  %v216_v0 = vmul.f32 %v214_v62, %v207_v61  ;;  %s225_s4 = scalar_lea.vmem %s735_s0, %s471_s28  ;;  %s360_s16 = scalar_lea.vmem %s738_s3, %s475_s11 }
  0x4d   : > { %s472_s5 = scalar_select %p230_p12, 0, 1  ;;  %v226_v3 = vld [vmem:[%s225_s4] sm:$0xff]  ;;  %v227_v4 = vld [vmem:[%s225_s4 + $0x8] sm:$0xff] }
  0x4e   : > { %v526_v1 = vpack.c.bf16 %v216_v0, %v215_v63  ;;  %p16_p13 = scmp.ge.s32.totalorder %s669_s15, 8   ;;  %s743_s12 = smov %s669_s15 }
  0x4f   : > { %s233_s6 = scvt.s32.f32 %s472_s5 }
  0x50   : > { %527 = vmatpush1.bf16.msra.mxu0 %v526_v1  ;;  %551 = vmatpush1.bf16.msra.mxu1 %v526_v1 }
  0x51   : > { %528 = vmatprep.subr.bf16.mxu0 %v572_v2  ;;  %541 = vmatprep.subr.bf16.mxu1 %v572_v2  ;;  %v234_v5 = vstv %s233_s6 }
  0x52   : > { %v235_v6 = vmul.f32 %v234_v5, %v226_v3  ;;  %v236_v7 = vmul.f32 %v234_v5, %v227_v4 }
  0x54   : > { %v529_v8 = vpack.c.bf16 %v236_v7, %v235_v6 }
  0x56   : > { %530 = vmatpush1.bf16.msra.mxu0 %v529_v8  ;;  %552 = vmatpush1.bf16.msra.mxu1 %v529_v8 }
  0x59   : > { %349 = vmatmul.mubr.f32.vlgmr.msra.gmra.mrb[0].mxu0 %v239_v9  ;;  %354 = vmatmul.mubr.f32.vlgmr.msra.gmra.mrb[0].mxu1 %v241_v10 }
  0x84   : > { %v270_v11 = vpop.permute.xlu0 %269 }
  0x88   : > { %v275_v12 = vpop.permute.xlu0 %274 }
 0x129   :  { %18 = sbr.rel (!%p16_p13) target bundleno = 1 (0x1), region = 51 }
 0x12c   : > { %v350_v2 = vpop.f32.mrb[0].mxu0  ;;  %v355_v13 = vpop.f32.mrb[0].mxu1 }
 0x12d   : > { %v351_v14 = vadd.f32 %v350_v2, %v270_v11  ;;  %v356_v15 = vadd.f32 %v355_v13, %v275_v12  ;;  %v352_v16 = vpop.f32.mrb[1].mxu0  ;;  %v357_v17 = vpop.f32.mrb[1].mxu1 }
 0x12f   : > { %361 = vst [vmem:[%s360_s16] sm:$0xff] %v351_v14  ;;  %362 = vst [vmem:[%s360_s16 + $0x8] sm:$0xff] %v356_v15 }

</bundles_post_ra>
